<compile_context>
chip_gen: v7x
topology: tpu7x:2x2x1
jax: 0.10.0
libtpu: 0.0.40
codegen_flags: <defaults>
</compile_context>

<pallas_src>
import functools

import jax
import jax.numpy as jnp
from jax.experimental import pallas as pl
from jax.experimental.pallas import tpu as pltpu


def _vmem_capacity_bytes() -> int:
    try:
        info = pltpu.get_tpu_info()
        cap = getattr(info, "vmem_capacity_bytes", None)
        if cap:
            return int(cap)
    except Exception:
        pass
    return 64 << 20  # conservative fallback (v7x per-core VMEM)


def _round_tile(tm: int, rows: int) -> int:
    rows_up8 = -(-rows // 8) * 8
    tm = min(tm, 1024, rows_up8)
    if tm >= 128:
        tm = (tm // 128) * 128
    else:
        tm = max(8, (tm // 8) * 8)
    return int(tm)


def _pick_tm(rows: int, in_size: int, out_size: int,
             in_itemsize: int, out_itemsize: int, vmem_cap: int) -> int:
    """Largest row tile whose double-buffered working set fits ~half of VMEM."""
    weight_bytes = 2 * in_size * out_size * in_itemsize      # resident (x2 safety)
    budget = max(vmem_cap // 2 - weight_bytes, 1 << 20)
    # per-row: double-buffered input block + f32 temps + double-buffered output
    bytes_per_row = in_size * (2 * in_itemsize + 4) + out_size * (4 + 2 * out_itemsize)
    tm = budget // max(bytes_per_row, 1)
    return _round_tile(tm, rows)


# ---------------------------------------------------------------------------
# Kernels
# ---------------------------------------------------------------------------

def _linear_out1_kernel(x_ref, w_ref, b_ref, o_ref):
    # x: (TM, K); w: (1, K); b: (1,) f32 in SMEM; o: (1, 1, TM) lane-dense
    x = x_ref[...].astype(jnp.float32)
    w = w_ref[...].astype(jnp.float32)          # broadcast over rows
    out = jnp.sum(x * w, axis=-1)               # VPU mul + XLU lane reduce -> (TM,)
    out = out + b_ref[0]
    o_ref[0, 0, :] = out.astype(o_ref.dtype)


def _linear_kernel(x_ref, w_ref, b_ref, o_ref):
    # x: (TM, K); w: (K, N); b: (1, N); o: (TM, N)
    acc = jnp.dot(x_ref[...], w_ref[...], preferred_element_type=jnp.float32)
    acc = acc + b_ref[...].astype(jnp.float32)
    o_ref[...] = acc.astype(o_ref.dtype)


# ---------------------------------------------------------------------------
# Wrapper
# ---------------------------------------------------------------------------

def parallel_linear(x, weight, bias=None, *, tm: int | None = None):
    """ParallelLinear forward.

    x:      [..., in_size]
    weight: [in_size, out_size]
    bias:   [out_size] or None
    returns [..., out_size]
    """
    *lead, in_size = x.shape
    k_in, out_size = weight.shape
    assert k_in == in_size, (k_in, in_size)

    rows = 1
    for d in lead:
        rows *= d
    x2d = x.reshape(rows, in_size)

    if bias is None:
        bias = jnp.zeros((out_size,), dtype=jnp.float32)

    in_itemsize = jnp.dtype(x.dtype).itemsize
    out_itemsize = in_itemsize
    vmem_cap = _vmem_capacity_bytes()
    if tm is None:
        tm = _pick_tm(rows, in_size, out_size, in_itemsize, out_itemsize, vmem_cap)
    assert tm % 8 == 0 and tm > 0
    num_tiles = pl.cdiv(rows, tm)

    compiler_params = pltpu.CompilerParams(
        dimension_semantics=("parallel",),           # 2-TC sharding on v7x
        vmem_limit_bytes=int(vmem_cap * 3 // 4),
    )

    if out_size == 1:
        # VPU reduce path, lane-dense (1, 1, TM) output blocks.
        w_row = weight.reshape(1, in_size)
        b_smem = bias.reshape(1).astype(jnp.float32)
        out3d = pl.pallas_call(
            _linear_out1_kernel,
            out_shape=jax.ShapeDtypeStruct((num_tiles, 1, tm), x.dtype),
            grid_spec=pltpu.PrefetchScalarGridSpec(
                num_scalar_prefetch=0,
                grid=(num_tiles,),
                in_specs=[
                    pl.BlockSpec((tm, in_size), lambda i: (i, 0)),
                    pl.BlockSpec((1, in_size), lambda i: (0, 0)),
                    pl.BlockSpec(memory_space=pltpu.MemorySpace.SMEM),
                ],
                out_specs=pl.BlockSpec((1, 1, tm), lambda i: (i, 0, 0)),
            ),
            compiler_params=compiler_params,
        )(x2d, w_row, b_smem)
        flat = out3d.reshape(num_tiles * tm)[:rows]
        return flat.reshape(*lead, 1)

    # MXU matmul path (out_size > 1); weight/bias blocks are grid-invariant.
    b2d = bias.reshape(1, out_size).astype(jnp.float32)
    out2d = pl.pallas_call(
        _linear_kernel,
        out_shape=jax.ShapeDtypeStruct((num_tiles * tm, out_size), x.dtype),
        grid_spec=pltpu.PrefetchScalarGridSpec(
            num_scalar_prefetch=0,
            grid=(num_tiles,),
            in_specs=[
                pl.BlockSpec((tm, in_size), lambda i: (i, 0)),
                pl.BlockSpec((in_size, out_size), lambda i: (0, 0)),
                pl.BlockSpec((1, out_size), lambda i: (0, 0)),
            ],
            out_specs=pl.BlockSpec((tm, out_size), lambda i: (i, 0)),
        ),
        compiler_params=compiler_params,
    )(x2d, weight, b2d)
    return out2d[:rows].reshape(*lead, out_size)


# ---------------------------------------------------------------------------
# Reference + test
# ---------------------------------------------------------------------------

def _reference(x, weight, bias):
    y = x.astype(jnp.float32) @ weight.astype(jnp.float32)
    if bias is not None:
        y = y + bias.astype(jnp.float32)
    return y.astype(x.dtype)


if __name__ == "__main__":
    B, S, H = 2, 8, 32

    key = jax.random.PRNGKey(0)
    k_x, k_w1, k_w2, k_b2 = jax.random.split(key, 4)

    x = jax.random.normal(k_x, (B, S, H), dtype=jnp.float32)

    # RowParallel-style case (in_size >= out_size): reward-model value head H -> 1.
    xavier_std1 = (2.0 / (H + 1)) ** 0.5
    w1 = xavier_std1 * jax.random.normal(k_w1, (H, 1), dtype=jnp.float32)
    b1 = jnp.zeros((1,), dtype=jnp.float32)

    out1 = jax.block_until_ready(parallel_linear(x, w1, b1))
    ref1 = _reference(x, w1, b1)
    assert out1.shape == (B, S, 1)
    assert jnp.allclose(out1, ref1, atol=1e-4, rtol=1e-4)

    # ColumnParallel-style case (in_size < out_size): H -> 64, nonzero bias.
    N = 64
    xavier_std2 = (2.0 / (H + N)) ** 0.5
    w2 = xavier_std2 * jax.random.normal(k_w2, (H, N), dtype=jnp.float32)
    b2 = 0.1 * jax.random.normal(k_b2, (N,), dtype=jnp.float32)

    out2 = jax.block_until_ready(parallel_linear(x, w2, b2))
    ref2 = _reference(x, w2, b2)
    assert out2.shape == (B, S, N)
    assert jnp.allclose(out2, ref2, atol=1e-4, rtol=1e-4)

    # No-bias path (module returns output unchanged when bias is None).
    out3 = jax.block_until_ready(parallel_linear(x, w2, None))
    ref3 = _reference(x, w2, None)
    assert jnp.allclose(out3, ref3, atol=1e-4, rtol=1e-4)

    print("KERNEL_OK")
</pallas_src>

<mosaic_0001>
module attributes {stable_mosaic.version = 11 : i64} {
  func.func @_linear_out1_kernel(%arg0: i32, %arg1: memref<16x32xf32, #tpu.memory_space<vmem>>, %arg2: memref<1x32xf32, #tpu.memory_space<vmem>>, %arg3: memref<1xf32, #tpu.memory_space<smem>>, %arg4: memref<1x1x16xf32, #tpu.memory_space<vmem>>) attributes {dimension_semantics = [#tpu.dimension_semantics<parallel>], iteration_bounds = array<i64: 1>, scalar_prefetch = 0 : i64, scratch_operands = 0 : i64, tpu.core_type = #tpu.core_type<tc>, window_params = [{transform_indices = @transform_0, window_bounds = array<i64: 16, 32>}, {pipeline_mode = #tpu.pipeline_mode<synchronous>, transform_indices = @transform_1, window_bounds = array<i64: 1, 32>}, {transform_indices = @transform_2, window_bounds = array<i64: 1>}, {transform_indices = @transform_3, window_bounds = array<i64: 1, 1, 16>}]} {
    %c0 = arith.constant 0 : index
    %c0_0 = arith.constant 0 : index
    %0 = vector.load %arg1[%c0, %c0_0] : memref<16x32xf32, #tpu.memory_space<vmem>>, vector<16x32xf32>
    %c0_1 = arith.constant 0 : index
    %c0_2 = arith.constant 0 : index
    %1 = vector.load %arg2[%c0_1, %c0_2] : memref<1x32xf32, #tpu.memory_space<vmem>>, vector<1x32xf32>
    %2 = vector.broadcast %1 : vector<1x32xf32> to vector<16x32xf32>
    %3 = arith.mulf %0, %2 : vector<16x32xf32>
    %cst = arith.constant dense<0.000000e+00> : vector<16xf32>
    %4 = vector.multi_reduction <add>, %3, %cst [1] : vector<16x32xf32> to vector<16xf32>
    %c0_3 = arith.constant 0 : index
    %5 = memref.load %arg3[%c0_3] : memref<1xf32, #tpu.memory_space<smem>>
    %6 = vector.broadcast %5 : f32 to vector<16xf32>
    %7 = arith.addf %4, %6 : vector<16xf32>
    %c0_4 = arith.constant 0 : index
    %c0_5 = arith.constant 0 : index
    %c0_6 = arith.constant 0 : index
    %8 = vector.load %arg4[%c0_4, %c0_5, %c0_6] : memref<1x1x16xf32, #tpu.memory_space<vmem>>, vector<1x1x16xf32>
    %9 = vector.shape_cast %8 : vector<1x1x16xf32> to vector<16xf32>
    %10 = vector.shape_cast %7 : vector<16xf32> to vector<1x1x16xf32>
    tpu.vector_store %arg4[%c0_4, %c0_5, %c0_6], %10 {strides = array<i32>} : memref<1x1x16xf32, #tpu.memory_space<vmem>>, vector<1x1x16xf32>,
    return
  }
  func.func @transform_0(%arg0: i32) -> (i32, i32) {
    %c0_i32 = arith.constant 0 : i32
    %c0_i32_0 = arith.constant 0 : i32
    return %arg0, %c0_i32 : i32, i32
  }
  func.func @transform_1(%arg0: i32) -> (i32, i32) {
    %c0_i32 = arith.constant 0 : i32
    %c0_i32_0 = arith.constant 0 : i32
    %c0_i32_1 = arith.constant 0 : i32
    return %c0_i32, %c0_i32_0 : i32, i32
  }
  func.func @transform_2(%arg0: i32) -> i32 {
    %c0_i32 = arith.constant 0 : i32
    %c0_i32_0 = arith.constant 0 : i32
    return %c0_i32 : i32
  }
  func.func @transform_3(%arg0: i32) -> (i32, i32, i32) {
    %c0_i32 = arith.constant 0 : i32
    %c0_i32_0 = arith.constant 0 : i32
    %c0_i32_1 = arith.constant 0 : i32
    return %arg0, %c0_i32, %c0_i32_0 : i32, i32, i32
  }
}

</mosaic_0001>

<bundles_post_ra>
// kernel: tpu_custom_call.1
= control target key start
LH: loop header
LB: loop body
LE: loop exit
PB: predicated region body
PF: predicated region fallthrough
CT: control target
= control target key end

     0   :  { %9 = vsyncpa [#allocation4], 0  ;;  %s192_s0 = inlined_call_operand.hbm [shape: f32[16,32], index: 0, kind: input, shape index: {}]   ;;  %s193_s1 = inlined_call_operand.vmem [shape: f32[1,32], index: 1, kind: input, shape index: {}]   ;;  %s194_s2 = inlined_call_operand.<no memory space> [shape: f32[1], index: 2, kind: input, shape index: {}]   ;;  %s195_s3 = inlined_call_operand.hbm [shape: f32[1,1,16], index: 3, kind: output, shape index: {}]  }
   0x1   :  { %10 = vsyncpa [#allocation5], 0  ;;  %s138_s12 = smov [#allocation3]   ;;  %s90_s16 = scalar_lea.hbm %s192_s0, 256 }
   0x2   :  { %s16_s13 = sshll.u32 %s138_s12, 4  ;;  %p91_p0 = scmp.ne.s32.totalorder %s192_s0, %s90_s16  ;;  %s17_s13 = int_to_ptr.vmem [resolvable:$true] %s16_s13 }
   0x3   :  { %p94_p1 = scmp.lt.u32.totalorder %s90_s16, %s192_s0 }
   0x5   :  { %p96_p2 = pnand %p94_p1, %p91_p0 }
   0x7   :  { %99 = shalt.err (!%p96_p2)
}
   0x8   :  { %s100_s21 = scalar_lea.vmem %s17_s13, 256  ;;  %p105_p4 = scmp.lt.s32.totalorder %s17_s13, %s17_s13 }
   0x9   :  { %p101_p3 = scmp.ne.s32.totalorder %s17_s13, %s100_s21  ;;  %p106_p5 = scmp.lt.s32.totalorder %s100_s21, %s100_s21 }
   0xb   :  { %p107_p6 = por %p106_p5, %p105_p4 }
   0xd   :  { %p108_p7 = pnand %p107_p6, %p101_p3 }
   0xf   :  { %111 = shalt.err (!%p108_p7)
}
  0x10   :  { %s139_s22 = smov 128   ;;  %s140_s23 = smov 8  }
  0x11   :  { %22 = dma.hbm_to_vmem [thread:$0]  %s192_s0, 256, %s17_s13, [#allocation4], %s139_s22, %s139_s22, %s140_s23  }
  0x12   :  { %134 = dma.done.wait [#allocation4], 256  }
  0x13   :  { %135 = vsyncadd [#allocation4], 4294967040  ;;  %v30_v0 = vld [vmem:[#allocation3] sm:$0xff]  ;;  %vm41_vm0 = vcmask 261120   ;;  %v31_v2 = vld [vmem:[#allocation3 + $0x8] sm:$0xff]  ;;  %v54_v7 = vlaneseq  ;;  %v49_v11 = vstv %s194_s2  ;;  %vm65_vm1 = vcmask 130112  }
  0x14   :  { %v85_v1 = vld [vmem:[%s193_s1] ss:$0 sm:$0xff]  ;;  %s141_s1 = smov [#allocation6]   ;;  %vm68_vm2 = vcmask 122880  }
  0x15   :  { %v39_v3 = vmul.f32 %v85_v1, %v30_v0  ;;  %v40_v4 = vmul.f32 %v85_v1, %v31_v2  ;;  %v55_v8 = vand.u32 127, %v54_v7  ;;  %v57_v9 = vshrl.u32 %v54_v7, 7  ;;  %s76_s29 = sshll.u32 %s141_s1, 4  ;;  %s77_s29 = int_to_ptr.vmem [resolvable:$true] %s76_s29 }
  0x16   :  { %s112_s30 = scalar_lea.vmem %s77_s29, 16  ;;  %s116_s4 = scalar_lea.vmem %s77_s29, 32 }
  0x17   :  { %v42_v5 = vsel %vm41_vm0, %v39_v3, 0.0  ;;  %v45_v6 = vsel %vm41_vm0, %v40_v4, 0.0  ;;  %v60_v10 = vadd.s32 4294967288, %v55_v8  ;;  %v58_v13 = vsub.s32 %v55_v8, %v57_v9  ;;  %p113_p8 = scmp.ne.s32.totalorder %s77_s29, %s112_s30  ;;  %p117_p9 = scmp.lt.s32.totalorder %s77_s29, %s77_s29 }
  0x18   :  { %43 = vadd.xlane.f32.xlu0 %v42_v5  ;;  %p118_p10 = scmp.lt.s32.totalorder %s116_s4, %s112_s30 }
  0x19   :  { %v63_v15 = vsub.s32 %v60_v10, %v57_v9 }
  0x1a   :  { %p119_p11 = por %p118_p10, %p117_p9 }
  0x1c   :  { %46 = vadd.xlane.f32.xlu0 %v45_v6  ;;  %p120_p12 = pnand %p119_p11, %p113_p8 }
  0xa5   :  { %v44_v12 = vpop.xlane.xlu0 %43 }
  0xa6   :  { %v50_v14 = vadd.f32 %v49_v11, %v44_v12 }
  0xa8   :  { %v59_v18 = vrot.slane %v50_v14, %v58_v13 }
  0xa9   :  { %v47_v16 = vpop.xlane.xlu0 %46 }
  0xaa   :  { %v51_v17 = vadd.f32 %v49_v11, %v47_v16 }
  0xac   :  { %v64_v19 = vrot.slane %v51_v17, %v63_v15 }
  0xae   :  { %v66_v20 = vsel %vm65_vm1, %v64_v19, %v59_v18 }
  0xaf   :  { %69 = vst.msk [vmem:[#allocation6] sm:$0x1] %vm68_vm2, %v66_v20 }
  0xb0   :  { %123 = shalt.err (!%p120_p12)
}
  0xb1   :  { %s124_s6 = scalar_lea.hbm %s195_s3, 16 }
  0xb2   :  { %p125_p13 = scmp.ne.s32.totalorder %s195_s3, %s124_s6  ;;  %p128_p0 = scmp.lt.u32.totalorder %s124_s6, %s195_s3 }
  0xb4   :  { %p130_p1 = pnand %p128_p0, %p125_p13 }
  0xb6   :  { %133 = shalt.err (!%p130_p1)
}
  0xb7   :  { %79 = dma.vmem_to_hbm [thread:$0]  %s77_s29, 16, %s195_s3, [#allocation5]  }
  0xb8   :  { %136 = dma.done.wait [#allocation5], 16  }
  0xb9   :  { %137 = vsyncadd [#allocation5], 4294967280 }
  0xba   :  { %83 = vsyncpa [#allocation4], 1 }
  0xbb   :  { %84 = vsyncpa [#allocation5], 1 }

</bundles_post_ra>
